<compile_context>
chip_gen: v7x
topology: tpu7x:2x2x1
jax: 0.10.0
libtpu: 0.0.40
codegen_flags: <defaults>
</compile_context>

<pallas_src>
import math

import jax
import jax.numpy as jnp
from jax.experimental import pallas as pl
from jax.experimental.pallas import tpu as pltpu


# --------------------------------------------------------------------------
# Kernel
# --------------------------------------------------------------------------
def _glm_rope_kernel(pos_ref, freq_ref, rot_ref, q_ref, k_ref, q_out, k_out):
    # pos_ref : (TS, 2)  f32  positions, channel 0 / channel 1 (sublane-major)
    # freq_ref: (2, D)   f32  per-lane angular frequencies for channel 0 / 1
    # rot_ref : (D, D)   qk-dtype  adjacent pair-rotation matrix (x @ rot == x2)
    # q_ref/q_out : (Hq, TS, D);  k_ref/k_out : (Hk, TS, D)
    dt = q_out.dtype

    # theta[s, i] = pos0[s] * freq0[i] + pos1[s] * freq1[i]   (f32, once/tile)
    theta = (pos_ref[:, 0:1] * freq_ref[0:1, :]
             + pos_ref[:, 1:2] * freq_ref[1:2, :])            # (TS, D)
    cos = jnp.cos(theta).astype(dt)                           # cast once, reuse
    sin = jnp.sin(theta).astype(dt)
    rot = rot_ref[...]

    def apply(x_ref, o_ref):
        nheads = x_ref.shape[0]

        def body(h, carry):
            x = x_ref[h]                                      # (TS, D)
            # adjacent pair rotation via tiny +-1 permutation matmul (exact)
            x2 = jnp.dot(x, rot, preferred_element_type=jnp.float32).astype(dt)
            o_ref[h] = x * cos + x2 * sin
            return carry

        jax.lax.fori_loop(0, nheads, body, 0, unroll=bool(nheads <= 8))

    apply(q_ref, q_out)
    apply(k_ref, k_out)


# --------------------------------------------------------------------------
# Tiling helper + pallas_call wrapper
# --------------------------------------------------------------------------
def _choose_seq_tile(S, rows_per_pos, D, itemsize, budget_bytes=20 * 1024 * 1024):
    """Largest seq tile whose double-buffered in+out blocks fit the VMEM budget."""
    denom = 4 * rows_per_pos * D * itemsize          # (in+out) x double buffer
    max_ts = max(8, budget_bytes // max(denom, 1))
    if S <= max_ts:
        return S
    start = min(S, max_ts)
    start -= start % 8
    for ts in range(start, 7, -8):                   # multiple of 8 -> legal block
        if S % ts == 0:
            return ts
    # TODO(synk): pad/mask ragged sequence tiles instead of full-S fallback.
    return S


def _glm_rope_forward(q, k, pos_f, freqs, rot):
    B, Hq, S, D = q.shape
    _, Hk, _, _ = k.shape
    itemsize = q.dtype.itemsize
    TS = _choose_seq_tile(S, Hq + Hk, D, itemsize)
    grid = (B, S // TS)

    q_spec = pl.BlockSpec((None, Hq, TS, D), lambda b, s: (b, 0, s, 0))
    k_spec = pl.BlockSpec((None, Hk, TS, D), lambda b, s: (b, 0, s, 0))

    bytes_accessed = int(2 * (Hq + Hk) * B * S * D * itemsize          # q,k r+w
                         + B * S * 2 * 4 + 2 * D * 4 + D * D * itemsize)
    flops = int(2 * (Hq + Hk) * B * S * D * D + 6 * (Hq + Hk) * B * S * D)
    transcendentals = int(2 * B * S * D)

    q_out, k_out = pl.pallas_call(
        _glm_rope_kernel,
        grid=grid,
        in_specs=[
            pl.BlockSpec((None, TS, 2), lambda b, s: (b, s, 0)),   # positions
            pl.BlockSpec((2, D), lambda b, s: (0, 0)),             # freqs (const)
            pl.BlockSpec((D, D), lambda b, s: (0, 0)),             # rot   (const)
            q_spec,
            k_spec,
        ],
        out_specs=[q_spec, k_spec],
        out_shape=[jax.ShapeDtypeStruct(q.shape, q.dtype),
                   jax.ShapeDtypeStruct(k.shape, k.dtype)],
        compiler_params=pltpu.CompilerParams(
            dimension_semantics=("parallel", "parallel"),
            vmem_limit_bytes=32 * 1024 * 1024),
        cost_estimate=pl.CostEstimate(flops=flops,
                                      transcendentals=transcendentals,
                                      bytes_accessed=bytes_accessed),
    )(pos_f, freqs, rot, q, k)
    # TODO(synk): optionally add input_output_aliases={3: 0, 4: 1} when the
    # caller can donate q/k buffers (skipped here so the test can reuse q/k).
    return q_out, k_out


# --------------------------------------------------------------------------
# Module wrapper
# --------------------------------------------------------------------------
class RopeGlmPositionEncodingPallas:
    """GLM RoPE: parent RoPE built with embedding_size // 2, rope_rank='adjacent',
    scaling_factor=1.0, rope_theta=10000.0, ntk_alpha=1.0 (defaults)."""

    def __init__(self, embedding_size, max_position=2048, rope_rank="adjacent",
                 scaling_factor=1.0, rope_theta=10000.0, ntk_alpha=1.0):
        assert rope_rank == "adjacent"
        assert embedding_size % 4 == 0
        inner = embedding_size // 2                  # parent gets embedding_size // 2
        base = float(rope_theta)
        if ntk_alpha is not None and ntk_alpha != 1.0:
            base = base * ntk_alpha ** (inner / (inner - 2))
        inv = jnp.exp(jnp.arange(0, inner, 2, dtype=jnp.float32)
                      * (-math.log(base) / inner))
        if scaling_factor is not None and scaling_factor != 1.0:
            inv = inv / scaling_factor
        self.inv_freq = inv                          # (D//4,) float32
        self.head_dim = embedding_size

        # Full-width per-lane frequency tables (repeat-interleaved inside each half).
        f_half = jnp.repeat(inv, 2)                  # (D//2,)
        zeros = jnp.zeros_like(f_half)
        self._freqs_2ch = jnp.stack(
            [jnp.concatenate([f_half, zeros]),       # channel 0 -> first half
             jnp.concatenate([zeros, f_half])],      # channel 1 -> second half
            axis=0).astype(jnp.float32)              # (2, D)
        self._freqs_1ch = jnp.stack(
            [jnp.concatenate([f_half, zeros]),
             jnp.zeros((embedding_size,), jnp.float32)],   # second half: identity
            axis=0).astype(jnp.float32)

        # Adjacent pair-rotation matrix P:  (x @ P)[..., 2j]   = -x[..., 2j+1]
        #                                   (x @ P)[..., 2j+1] =  x[..., 2j]
        col = jnp.arange(embedding_size)[None, :]
        row = jnp.arange(embedding_size)[:, None]
        self._rot_f32 = jnp.where(
            (col % 2 == 0) & (row == col + 1), -1.0,
            jnp.where((col % 2 == 1) & (row == col - 1), 1.0, 0.0),
        ).astype(jnp.float32)

        # TODO(synk): sin_cos_cached embedding-lookup path and dynamic cache
        # regrowth (seq_len > max_seq_len_cached) are host-side Python state in
        # the original module; not needed for the default forward reproduced here.

    def __call__(self, query_states, key_states, position_ids):
        assert query_states.dtype == key_states.dtype
        B, Hq, S, D = query_states.shape
        assert D == self.head_dim

        if position_ids.ndim == 3:                   # [B, 2, S] GLM two-channel
            pos0 = position_ids[:, 0, :]
            pos1 = position_ids[:, 1, :]
            freqs = self._freqs_2ch
        else:                                        # [B, S] -> second half untouched
            pos0 = position_ids
            pos1 = jnp.zeros_like(position_ids)
            freqs = self._freqs_1ch

        # Note: positions beyond 2^24 would lose precision in f32 (irrelevant
        # for normal context lengths).
        pos_f = jnp.stack([pos0, pos1], axis=-1).astype(jnp.float32)   # (B, S, 2)
        rot = self._rot_f32.astype(query_states.dtype)
        return _glm_rope_forward(query_states, key_states, pos_f, freqs, rot)


# ----------------------- pure-JAX reference (for checking) -----------------------
def _rope_ref(x, pos, inv_freq):
    theta = pos.astype(jnp.float32)[:, :, None] * inv_freq[None, None, :]  # [B,S,half]
    cos = jnp.repeat(jnp.cos(theta), 2, axis=-1)[:, None]                  # [B,1,S,d]
    sin = jnp.repeat(jnp.sin(theta), 2, axis=-1)[:, None]
    x2 = jnp.stack([-x[..., 1::2], x[..., 0::2]], axis=-1).reshape(x.shape)
    return x * cos + x2 * sin


def _glm_ref(q, k, pos_ids, inv_freq):
    D = q.shape[-1]
    d = D // 2
    q1, q2 = q[..., :d], q[..., d:]
    k1, k2 = k[..., :d], k[..., d:]
    if pos_ids.ndim == 3:
        q1 = _rope_ref(q1, pos_ids[:, 0, :], inv_freq)
        k1 = _rope_ref(k1, pos_ids[:, 0, :], inv_freq)
        q2 = _rope_ref(q2, pos_ids[:, 1, :], inv_freq)
        k2 = _rope_ref(k2, pos_ids[:, 1, :], inv_freq)
    else:
        q1 = _rope_ref(q1, pos_ids, inv_freq)
        k1 = _rope_ref(k1, pos_ids, inv_freq)
    return jnp.concatenate([q1, q2], -1), jnp.concatenate([k1, k2], -1)


if __name__ == "__main__":
    key = jax.random.PRNGKey(0)
    B, H, S, D = 2, 4, 8, 32
    kq, kk = jax.random.split(key, 2)
    q = jax.random.normal(kq, (B, H, S, D), dtype=jnp.float32)
    k = jax.random.normal(kk, (B, H, S, D), dtype=jnp.float32)

    # GLM-style two-channel position ids: [B, 2, S]
    pos_block = jnp.broadcast_to(jnp.arange(S, dtype=jnp.int32), (B, S))
    pos_ids = jnp.stack([pos_block, jnp.clip(pos_block - 2, 0)], axis=1)

    rope = RopeGlmPositionEncodingPallas(embedding_size=D)

    # 3-D (two-channel) position path
    q_out, k_out = rope(q, k, pos_ids)
    jax.block_until_ready((q_out, k_out))
    q_ref, k_ref = _glm_ref(q, k, pos_ids, rope.inv_freq)
    assert q_out.shape == q.shape and k_out.shape == k.shape
    assert jnp.allclose(q_out, q_ref, atol=1e-5, rtol=1e-5)
    assert jnp.allclose(k_out, k_ref, atol=1e-5, rtol=1e-5)

    # 2-D (single-channel) position path: second half of head_dim stays unrotated
    q_out2, k_out2 = rope(q, k, pos_block)
    jax.block_until_ready((q_out2, k_out2))
    q_ref2, k_ref2 = _glm_ref(q, k, pos_block, rope.inv_freq)
    assert jnp.allclose(q_out2, q_ref2, atol=1e-5, rtol=1e-5)
    assert jnp.allclose(k_out2, k_ref2, atol=1e-5, rtol=1e-5)

    print("KERNEL_OK")
</pallas_src>

<mosaic_0001>
module attributes {stable_mosaic.version = 11 : i64} {
  func.func @_glm_rope_kernel(%arg0: i32, %arg1: i32, %arg2: memref<1x8x2xf32, #tpu.memory_space<vmem>>, %arg3: memref<2x32xf32, #tpu.memory_space<vmem>>, %arg4: memref<32x32xf32, #tpu.memory_space<vmem>>, %arg5: memref<1x4x8x32xf32, #tpu.memory_space<vmem>>, %arg6: memref<1x4x8x32xf32, #tpu.memory_space<vmem>>, %arg7: memref<1x4x8x32xf32, #tpu.memory_space<vmem>>, %arg8: memref<1x4x8x32xf32, #tpu.memory_space<vmem>>) attributes {dimension_semantics = [#tpu.dimension_semantics<parallel>, #tpu.dimension_semantics<parallel>], iteration_bounds = array<i64: 2, 1>, scalar_prefetch = 0 : i64, scratch_operands = 0 : i64, tpu.core_type = #tpu.core_type<tc>, window_params = [{transform_indices = @transform_0, window_bounds = array<i64: 1, 8, 2>}, {pipeline_mode = #tpu.pipeline_mode<synchronous>, transform_indices = @transform_1, window_bounds = array<i64: 2, 32>}, {pipeline_mode = #tpu.pipeline_mode<synchronous>, transform_indices = @transform_2, window_bounds = array<i64: 32, 32>}, {transform_indices = @transform_3, window_bounds = array<i64: 1, 4, 8, 32>}, {transform_indices = @transform_4, window_bounds = array<i64: 1, 4, 8, 32>}, {transform_indices = @transform_5, window_bounds = array<i64: 1, 4, 8, 32>}, {transform_indices = @transform_6, window_bounds = array<i64: 1, 4, 8, 32>}]} {
    %c0 = arith.constant 0 : index
    %c0_0 = arith.constant 0 : index
    %c0_1 = arith.constant 0 : index
    %0 = vector.load %arg2[%c0, %c0_0, %c0_1] : memref<1x8x2xf32, #tpu.memory_space<vmem>>, vector<1x8x1xf32>
    %1 = vector.shape_cast %0 : vector<1x8x1xf32> to vector<8x1xf32>
    %c0_2 = arith.constant 0 : index
    %c0_3 = arith.constant 0 : index
    %2 = vector.load %arg3[%c0_2, %c0_3] : memref<2x32xf32, #tpu.memory_space<vmem>>, vector<1x32xf32>
    %3 = vector.broadcast %1 : vector<8x1xf32> to vector<8x32xf32>
    %4 = vector.broadcast %2 : vector<1x32xf32> to vector<8x32xf32>
    %5 = arith.mulf %3, %4 : vector<8x32xf32>
    %c0_4 = arith.constant 0 : index
    %c0_5 = arith.constant 0 : index
    %c1 = arith.constant 1 : index
    %6 = vector.load %arg2[%c0_4, %c0_5, %c1] : memref<1x8x2xf32, #tpu.memory_space<vmem>>, vector<1x8x1xf32>
    %7 = vector.shape_cast %6 : vector<1x8x1xf32> to vector<8x1xf32>
    %c1_6 = arith.constant 1 : index
    %c0_7 = arith.constant 0 : index
    %8 = vector.load %arg3[%c1_6, %c0_7] : memref<2x32xf32, #tpu.memory_space<vmem>>, vector<1x32xf32>
    %9 = vector.broadcast %7 : vector<8x1xf32> to vector<8x32xf32>
    %10 = vector.broadcast %8 : vector<1x32xf32> to vector<8x32xf32>
    %11 = arith.mulf %9, %10 : vector<8x32xf32>
    %12 = arith.addf %5, %11 : vector<8x32xf32>
    %13 = math.cos %12 : vector<8x32xf32>
    %14 = math.sin %12 : vector<8x32xf32>
    %c0_8 = arith.constant 0 : index
    %c0_9 = arith.constant 0 : index
    %15 = vector.load %arg4[%c0_8, %c0_9] : memref<32x32xf32, #tpu.memory_space<vmem>>, vector<32x32xf32>
    %c0_i32 = arith.constant 0 : i32
    %c0_10 = arith.constant 0 : index
    %16 = arith.index_cast %c0_i32 : i32 to index
    %c0_11 = arith.constant 0 : index
    %c0_12 = arith.constant 0 : index
    %17 = vector.load %arg5[%c0_10, %16, %c0_11, %c0_12] : memref<1x4x8x32xf32, #tpu.memory_space<vmem>>, vector<1x1x8x32xf32>
    %18 = vector.shape_cast %17 : vector<1x1x8x32xf32> to vector<8x32xf32>
    %cst = arith.constant dense<0.000000e+00> : vector<8x32xf32>
    %19 = tpu.matmul %18, %15, %cst {dimension_numbers = #tpu.dot_dimension_numbers<[1], [0], [0], [1], [0, 0, 1, 1], [], []>} : vector<8x32xf32>, vector<32x32xf32>, vector<8x32xf32> -> vector<8x32xf32>
    %20 = arith.mulf %18, %13 : vector<8x32xf32>
    %21 = arith.mulf %19, %14 : vector<8x32xf32>
    %22 = arith.addf %20, %21 : vector<8x32xf32>
    %c0_13 = arith.constant 0 : index
    %23 = arith.index_cast %c0_i32 : i32 to index
    %c0_14 = arith.constant 0 : index
    %c0_15 = arith.constant 0 : index
    %24 = vector.load %arg7[%c0_13, %23, %c0_14, %c0_15] : memref<1x4x8x32xf32, #tpu.memory_space<vmem>>, vector<1x1x8x32xf32>
    %25 = vector.shape_cast %24 : vector<1x1x8x32xf32> to vector<8x32xf32>
    %26 = vector.shape_cast %22 : vector<8x32xf32> to vector<1x1x8x32xf32>
    tpu.vector_store %arg7[%c0_13, %23, %c0_14, %c0_15], %26 {strides = array<i32>} : memref<1x4x8x32xf32, #tpu.memory_space<vmem>>, vector<1x1x8x32xf32>,
    %c1_i32 = arith.constant 1 : i32
    %c0_16 = arith.constant 0 : index
    %27 = arith.index_cast %c1_i32 : i32 to index
    %c0_17 = arith.constant 0 : index
    %c0_18 = arith.constant 0 : index
    %28 = vector.load %arg5[%c0_16, %27, %c0_17, %c0_18] : memref<1x4x8x32xf32, #tpu.memory_space<vmem>>, vector<1x1x8x32xf32>
    %29 = vector.shape_cast %28 : vector<1x1x8x32xf32> to vector<8x32xf32>
    %cst_19 = arith.constant dense<0.000000e+00> : vector<8x32xf32>
    %30 = tpu.matmul %29, %15, %cst_19 {dimension_numbers = #tpu.dot_dimension_numbers<[1], [0], [0], [1], [0, 0, 1, 1], [], []>} : vector<8x32xf32>, vector<32x32xf32>, vector<8x32xf32> -> vector<8x32xf32>
    %31 = arith.mulf %29, %13 : vector<8x32xf32>
    %32 = arith.mulf %30, %14 : vector<8x32xf32>
    %33 = arith.addf %31, %32 : vector<8x32xf32>
    %c0_20 = arith.constant 0 : index
    %34 = arith.index_cast %c1_i32 : i32 to index
    %c0_21 = arith.constant 0 : index
    %c0_22 = arith.constant 0 : index
    %35 = vector.load %arg7[%c0_20, %34, %c0_21, %c0_22] : memref<1x4x8x32xf32, #tpu.memory_space<vmem>>, vector<1x1x8x32xf32>
    %36 = vector.shape_cast %35 : vector<1x1x8x32xf32> to vector<8x32xf32>
    %37 = vector.shape_cast %33 : vector<8x32xf32> to vector<1x1x8x32xf32>
    tpu.vector_store %arg7[%c0_20, %34, %c0_21, %c0_22], %37 {strides = array<i32>} : memref<1x4x8x32xf32, #tpu.memory_space<vmem>>, vector<1x1x8x32xf32>,
    %c2_i32 = arith.constant 2 : i32
    %c0_23 = arith.constant 0 : index
    %38 = arith.index_cast %c2_i32 : i32 to index
    %c0_24 = arith.constant 0 : index
    %c0_25 = arith.constant 0 : index
    %39 = vector.load %arg5[%c0_23, %38, %c0_24, %c0_25] : memref<1x4x8x32xf32, #tpu.memory_space<vmem>>, vector<1x1x8x32xf32>
    %40 = vector.shape_cast %39 : vector<1x1x8x32xf32> to vector<8x32xf32>
    %cst_26 = arith.constant dense<0.000000e+00> : vector<8x32xf32>
    %41 = tpu.matmul %40, %15, %cst_26 {dimension_numbers = #tpu.dot_dimension_numbers<[1], [0], [0], [1], [0, 0, 1, 1], [], []>} : vector<8x32xf32>, vector<32x32xf32>, vector<8x32xf32> -> vector<8x32xf32>
    %42 = arith.mulf %40, %13 : vector<8x32xf32>
    %43 = arith.mulf %41, %14 : vector<8x32xf32>
    %44 = arith.addf %42, %43 : vector<8x32xf32>
    %c0_27 = arith.constant 0 : index
    %45 = arith.index_cast %c2_i32 : i32 to index
    %c0_28 = arith.constant 0 : index
    %c0_29 = arith.constant 0 : index
    %46 = vector.load %arg7[%c0_27, %45, %c0_28, %c0_29] : memref<1x4x8x32xf32, #tpu.memory_space<vmem>>, vector<1x1x8x32xf32>
    %47 = vector.shape_cast %46 : vector<1x1x8x32xf32> to vector<8x32xf32>
    %48 = vector.shape_cast %44 : vector<8x32xf32> to vector<1x1x8x32xf32>
    tpu.vector_store %arg7[%c0_27, %45, %c0_28, %c0_29], %48 {strides = array<i32>} : memref<1x4x8x32xf32, #tpu.memory_space<vmem>>, vector<1x1x8x32xf32>,
    %c3_i32 = arith.constant 3 : i32
    %c0_30 = arith.constant 0 : index
    %49 = arith.index_cast %c3_i32 : i32 to index
    %c0_31 = arith.constant 0 : index
    %c0_32 = arith.constant 0 : index
    %50 = vector.load %arg5[%c0_30, %49, %c0_31, %c0_32] : memref<1x4x8x32xf32, #tpu.memory_space<vmem>>, vector<1x1x8x32xf32>
    %51 = vector.shape_cast %50 : vector<1x1x8x32xf32> to vector<8x32xf32>
    %cst_33 = arith.constant dense<0.000000e+00> : vector<8x32xf32>
    %52 = tpu.matmul %51, %15, %cst_33 {dimension_numbers = #tpu.dot_dimension_numbers<[1], [0], [0], [1], [0, 0, 1, 1], [], []>} : vector<8x32xf32>, vector<32x32xf32>, vector<8x32xf32> -> vector<8x32xf32>
    %53 = arith.mulf %51, %13 : vector<8x32xf32>
    %54 = arith.mulf %52, %14 : vector<8x32xf32>
    %55 = arith.addf %53, %54 : vector<8x32xf32>
    %c0_34 = arith.constant 0 : index
    %56 = arith.index_cast %c3_i32 : i32 to index
    %c0_35 = arith.constant 0 : index
    %c0_36 = arith.constant 0 : index
    %57 = vector.load %arg7[%c0_34, %56, %c0_35, %c0_36] : memref<1x4x8x32xf32, #tpu.memory_space<vmem>>, vector<1x1x8x32xf32>
    %58 = vector.shape_cast %57 : vector<1x1x8x32xf32> to vector<8x32xf32>
    %59 = vector.shape_cast %55 : vector<8x32xf32> to vector<1x1x8x32xf32>
    tpu.vector_store %arg7[%c0_34, %56, %c0_35, %c0_36], %59 {strides = array<i32>} : memref<1x4x8x32xf32, #tpu.memory_space<vmem>>, vector<1x1x8x32xf32>,
    %c4_i32 = arith.constant 4 : i32
    %c0_i32_37 = arith.constant 0 : i32
    %c0_38 = arith.constant 0 : index
    %60 = arith.index_cast %c0_i32_37 : i32 to index
    %c0_39 = arith.constant 0 : index
    %c0_40 = arith.constant 0 : index
    %61 = vector.load %arg6[%c0_38, %60, %c0_39, %c0_40] : memref<1x4x8x32xf32, #tpu.memory_space<vmem>>, vector<1x1x8x32xf32>
    %62 = vector.shape_cast %61 : vector<1x1x8x32xf32> to vector<8x32xf32>
    %cst_41 = arith.constant dense<0.000000e+00> : vector<8x32xf32>
    %63 = tpu.matmul %62, %15, %cst_41 {dimension_numbers = #tpu.dot_dimension_numbers<[1], [0], [0], [1], [0, 0, 1, 1], [], []>} : vector<8x32xf32>, vector<32x32xf32>, vector<8x32xf32> -> vector<8x32xf32>
    %64 = arith.mulf %62, %13 : vector<8x32xf32>
    %65 = arith.mulf %63, %14 : vector<8x32xf32>
    %66 = arith.addf %64, %65 : vector<8x32xf32>
    %c0_42 = arith.constant 0 : index
    %67 = arith.index_cast %c0_i32_37 : i32 to index
    %c0_43 = arith.constant 0 : index
    %c0_44 = arith.constant 0 : index
    %68 = vector.load %arg8[%c0_42, %67, %c0_43, %c0_44] : memref<1x4x8x32xf32, #tpu.memory_space<vmem>>, vector<1x1x8x32xf32>
    %69 = vector.shape_cast %68 : vector<1x1x8x32xf32> to vector<8x32xf32>
    %70 = vector.shape_cast %66 : vector<8x32xf32> to vector<1x1x8x32xf32>
    tpu.vector_store %arg8[%c0_42, %67, %c0_43, %c0_44], %70 {strides = array<i32>} : memref<1x4x8x32xf32, #tpu.memory_space<vmem>>, vector<1x1x8x32xf32>,
    %c1_i32_45 = arith.constant 1 : i32
    %c0_46 = arith.constant 0 : index
    %71 = arith.index_cast %c1_i32_45 : i32 to index
    %c0_47 = arith.constant 0 : index
    %c0_48 = arith.constant 0 : index
    %72 = vector.load %arg6[%c0_46, %71, %c0_47, %c0_48] : memref<1x4x8x32xf32, #tpu.memory_space<vmem>>, vector<1x1x8x32xf32>
    %73 = vector.shape_cast %72 : vector<1x1x8x32xf32> to vector<8x32xf32>
    %cst_49 = arith.constant dense<0.000000e+00> : vector<8x32xf32>
    %74 = tpu.matmul %73, %15, %cst_49 {dimension_numbers = #tpu.dot_dimension_numbers<[1], [0], [0], [1], [0, 0, 1, 1], [], []>} : vector<8x32xf32>, vector<32x32xf32>, vector<8x32xf32> -> vector<8x32xf32>
    %75 = arith.mulf %73, %13 : vector<8x32xf32>
    %76 = arith.mulf %74, %14 : vector<8x32xf32>
    %77 = arith.addf %75, %76 : vector<8x32xf32>
    %c0_50 = arith.constant 0 : index
    %78 = arith.index_cast %c1_i32_45 : i32 to index
    %c0_51 = arith.constant 0 : index
    %c0_52 = arith.constant 0 : index
    %79 = vector.load %arg8[%c0_50, %78, %c0_51, %c0_52] : memref<1x4x8x32xf32, #tpu.memory_space<vmem>>, vector<1x1x8x32xf32>
    %80 = vector.shape_cast %79 : vector<1x1x8x32xf32> to vector<8x32xf32>
    %81 = vector.shape_cast %77 : vector<8x32xf32> to vector<1x1x8x32xf32>
    tpu.vector_store %arg8[%c0_50, %78, %c0_51, %c0_52], %81 {strides = array<i32>} : memref<1x4x8x32xf32, #tpu.memory_space<vmem>>, vector<1x1x8x32xf32>,
    %c2_i32_53 = arith.constant 2 : i32
    %c0_54 = arith.constant 0 : index
    %82 = arith.index_cast %c2_i32_53 : i32 to index
    %c0_55 = arith.constant 0 : index
    %c0_56 = arith.constant 0 : index
    %83 = vector.load %arg6[%c0_54, %82, %c0_55, %c0_56] : memref<1x4x8x32xf32, #tpu.memory_space<vmem>>, vector<1x1x8x32xf32>
    %84 = vector.shape_cast %83 : vector<1x1x8x32xf32> to vector<8x32xf32>
    %cst_57 = arith.constant dense<0.000000e+00> : vector<8x32xf32>
    %85 = tpu.matmul %84, %15, %cst_57 {dimension_numbers = #tpu.dot_dimension_numbers<[1], [0], [0], [1], [0, 0, 1, 1], [], []>} : vector<8x32xf32>, vector<32x32xf32>, vector<8x32xf32> -> vector<8x32xf32>
    %86 = arith.mulf %84, %13 : vector<8x32xf32>
    %87 = arith.mulf %85, %14 : vector<8x32xf32>
    %88 = arith.addf %86, %87 : vector<8x32xf32>
    %c0_58 = arith.constant 0 : index
    %89 = arith.index_cast %c2_i32_53 : i32 to index
    %c0_59 = arith.constant 0 : index
    %c0_60 = arith.constant 0 : index
    %90 = vector.load %arg8[%c0_58, %89, %c0_59, %c0_60] : memref<1x4x8x32xf32, #tpu.memory_space<vmem>>, vector<1x1x8x32xf32>
    %91 = vector.shape_cast %90 : vector<1x1x8x32xf32> to vector<8x32xf32>
    %92 = vector.shape_cast %88 : vector<8x32xf32> to vector<1x1x8x32xf32>
    tpu.vector_store %arg8[%c0_58, %89, %c0_59, %c0_60], %92 {strides = array<i32>} : memref<1x4x8x32xf32, #tpu.memory_space<vmem>>, vector<1x1x8x32xf32>,
    %c3_i32_61 = arith.constant 3 : i32
    %c0_62 = arith.constant 0 : index
    %93 = arith.index_cast %c3_i32_61 : i32 to index
    %c0_63 = arith.constant 0 : index
    %c0_64 = arith.constant 0 : index
    %94 = vector.load %arg6[%c0_62, %93, %c0_63, %c0_64] : memref<1x4x8x32xf32, #tpu.memory_space<vmem>>, vector<1x1x8x32xf32>
    %95 = vector.shape_cast %94 : vector<1x1x8x32xf32> to vector<8x32xf32>
    %cst_65 = arith.constant dense<0.000000e+00> : vector<8x32xf32>
    %96 = tpu.matmul %95, %15, %cst_65 {dimension_numbers = #tpu.dot_dimension_numbers<[1], [0], [0], [1], [0, 0, 1, 1], [], []>} : vector<8x32xf32>, vector<32x32xf32>, vector<8x32xf32> -> vector<8x32xf32>
    %97 = arith.mulf %95, %13 : vector<8x32xf32>
    %98 = arith.mulf %96, %14 : vector<8x32xf32>
    %99 = arith.addf %97, %98 : vector<8x32xf32>
    %c0_66 = arith.constant 0 : index
    %100 = arith.index_cast %c3_i32_61 : i32 to index
    %c0_67 = arith.constant 0 : index
    %c0_68 = arith.constant 0 : index
    %101 = vector.load %arg8[%c0_66, %100, %c0_67, %c0_68] : memref<1x4x8x32xf32, #tpu.memory_space<vmem>>, vector<1x1x8x32xf32>
    %102 = vector.shape_cast %101 : vector<1x1x8x32xf32> to vector<8x32xf32>
    %103 = vector.shape_cast %99 : vector<8x32xf32> to vector<1x1x8x32xf32>
    tpu.vector_store %arg8[%c0_66, %100, %c0_67, %c0_68], %103 {strides = array<i32>} : memref<1x4x8x32xf32, #tpu.memory_space<vmem>>, vector<1x1x8x32xf32>,
    %c4_i32_69 = arith.constant 4 : i32
    return
  }
  func.func @transform_0(%arg0: i32, %arg1: i32) -> (i32, i32, i32) {
    %c0_i32 = arith.constant 0 : i32
    %c0_i32_0 = arith.constant 0 : i32
    return %arg0, %arg1, %c0_i32 : i32, i32, i32
  }
  func.func @transform_1(%arg0: i32, %arg1: i32) -> (i32, i32) {
    %c0_i32 = arith.constant 0 : i32
    %c0_i32_0 = arith.constant 0 : i32
    %c0_i32_1 = arith.constant 0 : i32
    return %c0_i32, %c0_i32_0 : i32, i32
  }
  func.func @transform_2(%arg0: i32, %arg1: i32) -> (i32, i32) {
    %c0_i32 = arith.constant 0 : i32
    %c0_i32_0 = arith.constant 0 : i32
    %c0_i32_1 = arith.constant 0 : i32
    return %c0_i32, %c0_i32_0 : i32, i32
  }
  func.func @transform_3(%arg0: i32, %arg1: i32) -> (i32, i32, i32, i32) {
    %c0_i32 = arith.constant 0 : i32
    %c0_i32_0 = arith.constant 0 : i32
    %c0_i32_1 = arith.constant 0 : i32
    return %arg0, %c0_i32, %arg1, %c0_i32_0 : i32, i32, i32, i32
  }
  func.func @transform_4(%arg0: i32, %arg1: i32) -> (i32, i32, i32, i32) {
    %c0_i32 = arith.constant 0 : i32
    %c0_i32_0 = arith.constant 0 : i32
    %c0_i32_1 = arith.constant 0 : i32
    return %arg0, %c0_i32, %arg1, %c0_i32_0 : i32, i32, i32, i32
  }
  func.func @transform_5(%arg0: i32, %arg1: i32) -> (i32, i32, i32, i32) {
    %c0_i32 = arith.constant 0 : i32
    %c0_i32_0 = arith.constant 0 : i32
    %c0_i32_1 = arith.constant 0 : i32
    return %arg0, %c0_i32, %arg1, %c0_i32_0 : i32, i32, i32, i32
  }
  func.func @transform_6(%arg0: i32, %arg1: i32) -> (i32, i32, i32, i32) {
    %c0_i32 = arith.constant 0 : i32
    %c0_i32_0 = arith.constant 0 : i32
    %c0_i32_1 = arith.constant 0 : i32
    return %arg0, %c0_i32, %arg1, %c0_i32_0 : i32, i32, i32, i32
  }
}

</mosaic_0001>

<bundles_post_ra>
// kernel: tpu_custom_call.1
= control target key start
LH: loop header
LB: loop body
LE: loop exit
PB: predicated region body
PF: predicated region fallthrough
CT: control target
= control target key end

     0   :  { %s2521_s0 = inlined_call_operand.vmem [shape: f32[2,8,2], index: 0, kind: input, shape index: {}]   ;;  %s2522_s1 = inlined_call_operand.vmem [shape: f32[2,32], index: 1, kind: input, shape index: {}]   ;;  %s2523_s2 = inlined_call_operand.hbm [shape: f32[32,32], index: 2, kind: input, shape index: {}]   ;;  %s2524_s3 = inlined_call_operand.hbm [shape: f32[2,4,8,32], index: 3, kind: input, shape index: {}]   ;;  %s2525_s4 = inlined_call_operand.hbm [shape: f32[2,4,8,32], index: 4, kind: input, shape index: {}]   ;;  %s2526_s5 = inlined_call_operand.hbm [shape: f32[2,4,8,32], index: 5, kind: output, shape index: {0}]   ;;  %s2527_s6 = inlined_call_operand.hbm [shape: f32[2,4,8,32], index: 6, kind: output, shape index: {1}]  }
   0x1   :  { %2536 = sst [smem:[#allocation15_spill]] %s2524_s3 }
   0x2   :  { %12 = vsyncpa [#allocation3], 0 }
   0x3   :  { %13 = vsyncpa [#allocation6], 0 }
   0x4   :  { %15 = vsyncpa [#allocation6 + $0x1], 0 }
   0x5   :  { %16 = vsyncpa [#allocation4], 0 }
   0x6   :  { %18 = vsyncpa [#allocation4 + $0x1], 0 }
   0x7   :  { %19 = vsyncpa [#allocation10], 0 }
   0x8   :  { %21 = vsyncpa [#allocation10 + $0x1], 0  ;;  %s2066_s21 = smov 0   ;;  %s2068_s22 = smov 0  }
   0x9   :  { %s2070_s23 = smov 0   ;;  %s2072_s24 = smov 0  }
   0xa   :  { %s2074_s25 = smov 0   ;;  %s2076_s26 = smov 0  }
   0xb LB: > { %s39_s27 = sadd.s32 1, %s2005_s25  ;;  %s118_s28 = sadd.s32 1, %s1997_s23  ;;  %s2009_s26 = sphi %s2076_s26, %s27_s26   ;;  %s2005_s25 = sphi %s2074_s25, %s2560_s25   ;;  %s2001_s24 = sphi %s2072_s24, %s2559_s24   ;;  %s1997_s23 = sphi %s2070_s23, %s2558_s23   ;;  %s1993_s22 = sphi %s2068_s22, %s2557_s22   ;;  %s1989_s21 = sphi %s2066_s21, %s2556_s21  }
   0xc   : > { %p41_p0 = scmp.ge.s32.totalorder %s39_s27, 2  ;;  %p125_p1 = scmp.ne.s32.totalorder %s1997_s23, %s1993_s22 }
   0xd   : > { %p126_p2 = scmp.eq.s32.totalorder %s2009_s26, 0  ;;  %p1730_p6 = scmp.lt.s32.totalorder %s2009_s26, 2 }
   0xe   : > { %s2562_s27 = smov (%p41_p0, %s39_s27), 0  ;;  %s265_s7 = sand.u32 1, %s2009_s26  }
   0xf   : > { %p2106_p3 = por %p126_p2, %p125_p1  ;;  %s113_s30 = ssub.s32 %s2005_s25, %s2562_s27 }
  0x10   : > { %p116_p5 = scmp.eq.s32.totalorder %s113_s30, 0  ;;  %s267_s8 = sand.u32 1, %s1997_s23  }
  0x11   : > { %s2119_s10 = sshll.u32 %s267_s8, 5  ;;  %s1515_s11 = sshll.u32 %s2005_s25, 9 }
  0x12   : > { %s2117_s9 = scalar_select %p116_p5, %s1997_s23, %s118_s28  }
  0x13   : > { %s2538_s3 = sld [smem:[#allocation15_spill]]  ;;  %s269_s15 = scalar_lea.vmem [#allocation5], %s2119_s10 }
  0x14   : > { %s277_s16 = sshll.u32 %s269_s15, 4  ;;  %p2132_p7 = pnand %p1730_p6, %p2106_p3  ;;  %s2128_s16 = int_to_ptr.vmem [resolvable:$true] %s277_s16 }
  0x15   : > { %s2139_s20 = scalar_lea.hbm %s2525_s4, %s1515_s11  ;;  %s2141_s28 = scalar_lea.sflag [#allocation6], %s265_s7 }
  0x16   : > { %p1805_p9 = pneg %p2132_p7 }
  0x19   : > { %s2125_s14 = scalar_lea.hbm %s2538_s3, %s1515_s11  ;;  %s1808_s12 = scalar_lea.hbm %s2538_s3, 1024 }
  0x1a   : > { %s1803_s30 = scalar_lea.hbm %s2125_s14, 512  ;;  %p1809_p12 = scmp.lt.u32.totalorder %s2125_s14, %s2538_s3 }
  0x1b   : > { %p1804_p8 = scmp.ne.s32.totalorder %s2125_s14, %s1803_s30  ;;  %p1810_p13 = scmp.lt.u32.totalorder %s1808_s12, %s1803_s30 }
  0x1c   : > { %p1812_p2 = scmp.lt.u32.totalorder %s1803_s30, %s2125_s14 }
  0x1d   : > { %p1806_p10 = pnand %p1805_p9, %p1804_p8  ;;  %p1811_p0 = por %p1810_p13, %p1809_p12 }
  0x1f   : > { %p1807_p11 = pneg %p1806_p10  ;;  %p1813_p3 = por %p1812_p2, %p1811_p0 }
  0x21   : > { %p1814_p5 = pnand %p1813_p3, %p1807_p11 }
  0x23   : > { %1817 = shalt.err (!%p1814_p5)
}
  0x24   : > { %s1818_s7 = scalar_lea.vmem %s2128_s16, 512  ;;  %s2011_s11 = smov [#allocation5]  }
  0x25   : > { %p1819_p6 = scmp.ne.s32.totalorder %s2128_s16, %s1818_s7  ;;  %s1823_s18 = sshll.u32 %s2011_s11, 4  ;;  %s1824_s18 = int_to_ptr.vmem [resolvable:$false] %s1823_s18 }
  0x26   : > { %s1825_s19 = scalar_lea.vmem %s1824_s18, 1024  ;;  %p1826_p4 = scmp.lt.s32.totalorder %s2128_s16, %s1824_s18 }
  0x27   : > { %p1821_p8 = pnand %p1819_p6, %p1805_p9  ;;  %p1827_p12 = scmp.lt.s32.totalorder %s1825_s19, %s1818_s7 }
  0x29   : > { %p1822_p10 = pneg %p1821_p8  ;;  %p1828_p13 = por %p1827_p12, %p1826_p4 }
  0x2b   : > { %p1829_p0 = pnand %p1828_p13, %p1822_p10 }
  0x2d   : > { %1832 = shalt.err (!%p1829_p0)
}
  0x2e   : > { %s2528_s30 = smov 128   ;;  %s2530_s29 = smov 8  }
  0x2f   : > { %1718 = dma.hbm_to_vmem [thread:$0]  (!%p2132_p7), %s2125_s14, 512, %s2128_s16, %s2141_s28, %s2528_s30, %s2528_s30, %s2530_s29  }
  0x30   : > { %s291_s8 = scalar_lea.vmem [#allocation7], %s2119_s10  ;;  %s2174_s13 = sadd.s32 4294967295, %s2009_s26  }
  0x31   : > { %s299_s12 = sshll.u32 %s291_s8, 4  ;;  %s1460_s15 = sadd.s32 4294967294, %s2009_s26   ;;  %s2200_s12 = int_to_ptr.vmem [resolvable:$true] %s299_s12 }
  0x32   : > { %p131_p4 = scmp.ne.s32.totalorder %s1993_s22, %s1989_s21  ;;  %p2532_p11 = scmp.eq.s32.totalorder %s2174_s13, 0 }
  0x33   : > { %p185_p2 = scmp.eq.s32.totalorder %s2174_s13, 1  ;;  %p191_p3 = scmp.eq.s32.totalorder %s1460_s15, 1 }
  0x34   : > { %p1461_p5 = scmp.ge.s32.totalorder %s2009_s26, 1  ;;  %p2184_p6 = por %p2532_p11, %p131_p4 }
  0x35   : > { %p2191_p8 = por %p185_p2, %p125_p1  ;;  %p2195_p10 = por %p191_p3, %p131_p4 }
  0x36   : > { %s2540_s14 = scalar_select %p2184_p6, 1, 0 }
  0x37   : > { %s2541_s10 = scalar_select %p2191_p8, 1, 0 }
  0x38   : > { %s2542_s16 = scalar_select %p2195_p10, 1, 0 }
  0x39   : > { %p226_p12 = scmp.lt.s32.totalorder %s2009_s26, 3  ;;  %s2014_s11 = smov [#allocation2]  }
  0x3a   : > { %s2206_s18 = sshll.u32 %s2014_s11, 4  ;;  %s1833_s19 = scalar_lea.hbm %s2139_s20, 512  ;;  %s242_s18 = int_to_ptr.vmem [resolvable:$true] %s2206_s18 }
  0x3b   : > { %p2202_p13 = pnand %p1461_p5, %p226_p12  ;;  %p1834_p0 = scmp.ne.s32.totalorder %s2139_s20, %s1833_s19 }
  0x3c   : > { %s1838_s30 = scalar_lea.hbm %s2525_s4, 1024  ;;  %p1839_p3 = scmp.lt.u32.totalorder %s2139_s20, %s2525_s4 }
  0x3d   : > { %s2543_s7 = scalar_select %p2202_p13, 1, 0 }
  0x3e   : > { %p1836_p4 = pnand %p1834_p0, %p1805_p9  ;;  %p1840_p5 = scmp.lt.u32.totalorder %s1838_s30, %s1833_s19 }
  0x3f   : > { %p1842_p11 = scmp.lt.u32.totalorder %s1833_s19, %s2139_s20 }
  0x40   : > { %p1837_p2 = pneg %p1836_p4  ;;  %p1841_p12 = por %p1840_p5, %p1839_p3 }
  0x42   : > { %p1843_p10 = por %p1842_p11, %p1841_p12 }
  0x44   : > { %p1844_p8 = pnand %p1843_p10, %p1837_p2 }
  0x46   : > { %1847 = shalt.err (!%p1844_p8)
}
  0x47   : > { %s1848_s11 = scalar_lea.vmem %s2200_s12, 512  ;;  %s2015_s8 = smov [#allocation7]  }
  0x48   : > { %p1849_p0 = scmp.ne.s32.totalorder %s2200_s12, %s1848_s11  ;;  %s1853_s15 = sshll.u32 %s2015_s8, 4  ;;  %s1854_s15 = int_to_ptr.vmem [resolvable:$false] %s1853_s15 }
  0x49   : > { %s1855_s3 = scalar_lea.vmem %s1854_s15, 1024  ;;  %p1856_p6 = scmp.lt.s32.totalorder %s2200_s12, %s1854_s15 }
  0x4a   : > { %p1851_p4 = pnand %p1849_p0, %p1805_p9  ;;  %p1857_p3 = scmp.lt.s32.totalorder %s1855_s3, %s1848_s11 }
  0x4c   : > { %p1852_p1 = pneg %p1851_p4  ;;  %p1858_p5 = por %p1857_p3, %p1856_p6 }
  0x4e   : > { %p1859_p11 = pnand %p1858_p5, %p1852_p1 }
  0x50   : > { %1862 = shalt.err (!%p1859_p11)
}
  0x51   : > { %s2544_s30 = smov 8   ;;  %s2545_s29 = smov 128  }
  0x52   : > { %1721 = dma.hbm_to_vmem [thread:$0]  (!%p2132_p7), %s2139_s20, 512, %s2200_s12, %s2141_s28, %s2545_s29, %s2545_s29, %s2544_s30  }
  0x53   : > { %p2546_p9 = scmp.eq.s32.totalorder %s2174_s13, 0  ;;  %p2547_p8 = pneg %p2202_p13 }
  0x54   : > { %s1863_s8 = scalar_lea.hbm %s2523_s2, 512 }
  0x55   : > { %p2243_p10 = pnand %p2547_p8, %p2546_p9  ;;  %p1864_p6 = scmp.ne.s32.totalorder %s2523_s2, %s1863_s8 }
  0x56   : > { %p1870_p12 = scmp.lt.u32.totalorder %s1863_s8, %s2523_s2 }
  0x57   : > { %p1865_p1 = pneg %p2243_p10 }
  0x59   : > { %p1866_p7 = pnand %p1865_p1, %p1864_p6 }
  0x5b   : > { %p1867_p2 = pneg %p1866_p7 }
  0x5d   : > { %p1872_p0 = pnand %p1870_p12, %p1867_p2 }
  0x5f   : > { %1875 = shalt.err (!%p1872_p0)
}
  0x60   : > { %s1876_s12 = scalar_lea.vmem %s242_s18, 512  ;;  %p1884_p11 = scmp.lt.s32.totalorder %s242_s18, %s242_s18 }
  0x61   : > { %p1877_p4 = scmp.ne.s32.totalorder %s242_s18, %s1876_s12  ;;  %p1885_p9 = scmp.lt.s32.totalorder %s1876_s12, %s1876_s12 }
  0x63   : > { %p1879_p3 = pnand %p1877_p4, %p1865_p1  ;;  %p1886_p8 = por %p1885_p9, %p1884_p11 }
  0x65   : > { %p1880_p5 = pneg %p1879_p3 }
  0x67   : > { %p1887_p13 = pnand %p1886_p8, %p1880_p5 }
  0x69   : > { %1890 = shalt.err (!%p1887_p13)
}
  0x6a   : > { %1714 = dma.hbm_to_vmem [thread:$0]  (!%p2243_p10), %s2523_s2, 512, %s242_s18, [#allocation3], %s2545_s29, %s2545_s29, %s2544_s30  }
  0x6b   : > { %p2549_p6 = scmp.ne.s32.totalorder %s2543_s7, 0 }
  0x6c   : > { %p2550_p1 = scmp.eq.s32.totalorder (!%p2549_p6), %s2174_s13, 0 }
  0x6d   : > { %311 = sbr.rel (%p2549_p6) target bundleno = 397 (0x18d), region = 40 }
  0x74   : > { %1972 = dma.done.wait (%p2550_p1), [#allocation3], 512   ;;  %p2551_p7 = pmov %p2550_p1 }
  0x75   : > { %s317_s19 = sand.u32 1, %s2174_s13   ;;  %s2274_s8 = sand.u32 1, %s1993_s22  }
  0x76   : > { %1974 = vsyncadd (%p2551_p7), [#allocation3], 4294966784  ;;  %s2277_s15 = sshll.u32 %s2274_s8, 5  ;;  %s318_s18 = scalar_lea.sflag [#allocation6], %s317_s19 }
  0x77   : > { %s2280_s30 = scalar_lea.vmem [#allocation5], %s2277_s15  ;;  %p2552_p13 = scmp.ne.s32.totalorder %s2540_s14, 0 }
  0x79   : > { %1976 = dma.done.wait (%p2552_p13), %s318_s18, 1024  }
  0x7a   : > { %1978 = vsyncadd (%p2552_p13), %s318_s18, 4294966272  ;;  %p376_p10 = scmp.lt.s32.totalorder %s2001_s24, 1  ;;  %v2016_v0 = vmov 0   ;;  %v2017_v1 = vmov 0.0|0.0   ;;  %vm2018_vm0 = vmmov 0   ;;  %v2019_v2 = vmov 0.0  }
  0x7b   : > { %1797 = vset.pattern.permute.xlu0 %v2016_v0  ;;  %1647 = vmatprep.subr.bf16.mxu0 %v2017_v1  ;;  %v613_v4 = vld [vmem:[#allocation2] sm:$0xff]  ;;  %v614_v5 = vld [vmem:[#allocation2 + $0x8] sm:$0xff]  ;;  %v615_v7 = vld [vmem:[#allocation2 + $0x10] sm:$0xff]  ;;  %v2020_v10 = vmov 1   ;;  %vm618_vm1 = vcmask 261120   ;;  %s330_s20 = scalar_lea.vmem [#allocation7], %s2277_s15 }
  0x7c   : > { %s377_s13 = scalar_select %p376_p10, %s2001_s24, 1  ;;  %1653 = vmatprep.subr.bf16.mxu1 %v2017_v1  ;;  %1567 = vmatprep.mubr.msk.f32.mxu0 %vm2018_vm0, %v2019_v2  ;;  %v1648_v6 = vpack.c.bf16 %v614_v5, %v613_v4  ;;  %v616_v8 = vld [vmem:[#allocation2 + $0x18] sm:$0xff]  ;;  %v2300_v11 = vld [vmem:[%s2280_s30] sm:$0xff]  ;;  %v2303_v12 = vld [vmem:[%s2280_s30 + $0x8] sm:$0xff]  ;;  %v2021_v37 = vmov 683565275  }
  0x7d   : > { %1578 = vmatprep.mubr.msk.f32.mxu1 %vm2018_vm0, %v2019_v2  ;;  %v1651_v9 = vpack.c.bf16 %v616_v8, %v615_v7  ;;  %v2318_v13 = vld [vmem:[%s2280_s30 + $0x10] sm:$0xff]  ;;  %v2321_v14 = vld [vmem:[%s2280_s30 + $0x18] sm:$0xff]  ;;  %v2336_v15 = vld [vmem:[%s330_s20] sm:$0xff]  ;;  %v2022_v39 = vmov 2475754826   ;;  %s368_s19 = scalar_lea.vmem [#allocation8], %s2277_s15 }
  0x7e   : > { %s1476_s14 = sshll.u32 %s377_s13, 3  ;;  %1649 = vmatpush3.bf16.msra.mxu0 %v1648_v6  ;;  %1655 = vmatpush3.bf16.msra.mxu1 %v1648_v6  ;;  %v2338_v16 = vld [vmem:[%s330_s20 + $0x8] sm:$0xff]  ;;  %v2352_v17 = vld [vmem:[%s330_s20 + $0x10] sm:$0xff]  ;;  %v2354_v18 = vld [vmem:[%s330_s20 + $0x18] sm:$0xff]  ;;  %v2023_v41 = vmov 2131351028  }
  0x7f   : > { %s382_s3 = scalar_lea.vmem %s2521_s0, %s1476_s14  ;;  %1650 = vmatprep.subr.bf16.mxu0 %v2017_v1  ;;  %1656 = vmatprep.subr.bf16.mxu1 %v2017_v1  ;;  %v1477_v20 = vld [vmem:[%s2522_s1] ss:$0 sm:$0xff]  ;;  %v1478_v21 = vld [vmem:[%s2522_s1 + $0x1] ss:$0 sm:$0xff]  ;;  %v2024_v43 = vmov 2102212464  }
  0x80   : > { %v383_v3 = vld [vmem:[%s382_s3] sm:$0xff]  ;;  %v2025_v45 = vmov 920167782   ;;  %v2026_v52 = vmov 1326507024   ;;  %s1274_s18 = sshll.u32 %s368_s19, 4  ;;  %s2401_s18 = int_to_ptr.vmem [resolvable:$true] %s1274_s18 }
  0x81   : > { %387 = vperm.xlu0 %1797, %v383_v3   ;;  %s1517_s30 = sshll.u32 %s2001_s24, 9  ;;  %s1255_s29 = scalar_lea.sflag [#allocation4], %s2274_s8 }
  0x82   : > { %1652 = vmatpush3.bf16.msra.mxu0 %v1651_v9  ;;  %1658 = vmatpush3.bf16.msra.mxu1 %v1651_v9  ;;  %s2414_s7 = scalar_lea.hbm %s2526_s5, %s1517_s30  ;;  %s1891_s3 = scalar_lea.vmem %s2401_s18, 512 }
  0x83   : > { %1659 = vmatprep.subr.bf16.mxu0 %v2017_v1  ;;  %1665 = vmatprep.subr.bf16.mxu1 %v2017_v1  ;;  %p1892_p2 = scmp.ne.s32.totalorder %s2401_s18, %s1891_s3  ;;  %p2553_p12 = scmp.ne.s32.totalorder %s2541_s10, 0 }
  0x84   : > { %s2027_s20 = smov [#allocation8]  }
  0x85   : > { %1798 = vset.pattern.permute.xlu0 %v2020_v10  ;;  %1568 = vmatmul.mubr.msk.f32.vlgmr.msra.gmra.mrb[0].mxu0 %vm618_vm1, %v2300_v11  ;;  %p1893_p0 = pnand %p1892_p2, %p2553_p12  ;;  %s1895_s28 = sshll.u32 %s2027_s20, 4  ;;  %s1896_s28 = int_to_ptr.vmem [resolvable:$false] %s1895_s28 }
  0x86   : > { %397 = vperm.xlu0 %1798, %v383_v3   ;;  %1579 = vmatmul.mubr.msk.f32.vlgmr.msra.gmra.mrb[0].mxu1 %vm618_vm1, %v2303_v12  ;;  %s1897_s12 = scalar_lea.vmem %s1896_s28, 1024  ;;  %p1898_p3 = scmp.lt.s32.totalorder %s2401_s18, %s1896_s28 }
  0x87   : > { %1661 = vmatpush3.bf16.msra.mxu0 %v1648_v6  ;;  %1667 = vmatpush3.bf16.msra.mxu1 %v1648_v6  ;;  %p1894_p4 = pneg %p1893_p0  ;;  %p1899_p5 = scmp.lt.s32.totalorder %s1897_s12, %s1891_s3 }
  0x88   : > { %1662 = vmatprep.subr.bf16.mxu0 %v2017_v1  ;;  %1668 = vmatprep.subr.bf16.mxu1 %v2017_v1 }
  0x89   : > { %1589 = vmatprep.mubr.msk.f32.mxu0 %vm2018_vm0, %v2019_v2  ;;  %1600 = vmatprep.mubr.msk.f32.mxu1 %vm2018_vm0, %v2019_v2  ;;  %p1900_p11 = por %p1899_p5, %p1898_p3 }
  0x8b   : > { %1664 = vmatpush3.bf16.msra.mxu0 %v1651_v9  ;;  %1670 = vmatpush3.bf16.msra.mxu1 %v1651_v9  ;;  %p1901_p9 = pnand %p1900_p11, %p1894_p4 }
  0x8c   : > { %1671 = vmatprep.subr.bf16.mxu0 %v2017_v1  ;;  %1677 = vmatprep.subr.bf16.mxu1 %v2017_v1 }
  0x8e   : > { %1590 = vmatmul.mubr.msk.f32.vlgmr.msra.gmra.mrb[2].mxu0 %vm618_vm1, %v2318_v13  ;;  %1601 = vmatmul.mubr.msk.f32.vlgmr.msra.gmra.mrb[2].mxu1 %vm618_vm1, %v2321_v14 }
  0x8f   : > { %1673 = vmatpush3.bf16.msra.mxu0 %v1648_v6  ;;  %1679 = vmatpush3.bf16.msra.mxu1 %v1648_v6 }
  0x90   : > { %1674 = vmatprep.subr.bf16.mxu0 %v2017_v1  ;;  %1680 = vmatprep.subr.bf16.mxu1 %v2017_v1 }
  0x91   : > { %1611 = vmatprep.mubr.msk.f32.mxu0 %vm2018_vm0, %v2019_v2  ;;  %1622 = vmatprep.mubr.msk.f32.mxu1 %vm2018_vm0, %v2019_v2 }
  0x93   : > { %1676 = vmatpush3.bf16.msra.mxu0 %v1651_v9  ;;  %1682 = vmatpush3.bf16.msra.mxu1 %v1651_v9 }
  0x94   : > { %1683 = vmatprep.subr.bf16.mxu0 %v2017_v1  ;;  %1689 = vmatprep.subr.bf16.mxu1 %v2017_v1 }
  0x96   : > { %1612 = vmatmul.mubr.msk.f32.vlgmr.msra.gmra.mrb[4].mxu0 %vm618_vm1, %v2336_v15  ;;  %1623 = vmatmul.mubr.msk.f32.vlgmr.msra.gmra.mrb[4].mxu1 %vm618_vm1, %v2338_v16 }
  0x97   : > { %1685 = vmatpush3.bf16.msra.mxu0 %v1648_v6  ;;  %1691 = vmatpush3.bf16.msra.mxu1 %v1648_v6 }
  0x98   : > { %1686 = vmatprep.subr.bf16.mxu0 %v2017_v1  ;;  %1692 = vmatprep.subr.bf16.mxu1 %v2017_v1 }
  0x99   : > { %1633 = vmatprep.mubr.msk.f32.mxu0 %vm2018_vm0, %v2019_v2  ;;  %1644 = vmatprep.mubr.msk.f32.mxu1 %vm2018_vm0, %v2019_v2 }
  0x9b   : > { %1688 = vmatpush3.bf16.msra.mxu0 %v1651_v9  ;;  %1694 = vmatpush3.bf16.msra.mxu1 %v1651_v9 }
  0x9e   : > { %1634 = vmatmul.mubr.msk.f32.vlgmr.msra.gmra.mrb[6].mxu0 %vm618_vm1, %v2352_v17  ;;  %1645 = vmatmul.mubr.msk.f32.vlgmr.msra.gmra.mrb[6].mxu1 %vm618_vm1, %v2354_v18 }
 0x100   : > { %v388_v19 = vpop.permute.xlu0 %387 }
 0x101   : > { %v394_v22 = vmul.f32 %v1477_v20, %v388_v19 }
 0x105   : > { %v398_v23 = vpop.permute.xlu0 %397 }
 0x106   : > { %v404_v24 = vmul.f32 %v1478_v21, %v398_v23 }
 0x108   : > { %v2366_v25 = vadd.f32 %v404_v24, %v394_v22 }
 0x10a   : > { %v409_v26 = vand.u32 2139095040, %v2366_v25  ;;  %v406_v28 = vand.u32 2147483647, %v2366_v25  ;;  %vm408_vm9 = vcmp.lt.s32.totalorder %v2366_v25, 0 }
 0x10c   : > { %v410_v27 = vshrl.u32 %v409_v26, 23  ;;  %v413_v31 = vand.u32 8388607, %v406_v28  ;;  %vm407_vm10 = vcmp.le.f32.partialorder %v406_v28, 0.7853982 }
 0x10e   : > { %v1479_v29 = vadd.s32 4294967169, %v410_v27  ;;  %v414_v34 = vor.u32 8388608, %v413_v31 }
 0x110   : > { %v416_v30 = vadd.s32 1, %v1479_v29  ;;  %v454_v54 = vshll.u32 %v414_v34, 8 }
 0x112   : > { %vm417_vm2 = vcmp.gt.s32.totalorder %v416_v30, 0 }
 0x113   : > { %v418_v32 = vsel %vm417_vm2, %v416_v30, 0  ;;  %vm498_vm2 = vweird.f32 %v2366_v25 }
 0x114   : > { %v420_v33 = vand.u32 31, %v418_v32  ;;  %v419_v35 = vshrl.u32 %v418_v32, 5 }
 0x116   : > { %v421_v36 = vsub.s32 32, %v420_v33  ;;  %v423_v38 = vshll.u32 %v2021_v37, %v420_v33  ;;  %v426_v40 = vshll.u32 %v2022_v39, %v420_v33  ;;  %v429_v42 = vshll.u32 %v2023_v41, %v420_v33 }
 0x117   : > { %v432_v44 = vshll.u32 %v2024_v43, %v420_v33  ;;  %v435_v46 = vshll.u32 %v2025_v45, %v420_v33  ;;  %vm438_vm3 = vcmp.lt.s32.totalorder %v419_v35, 1  ;;  %vm441_vm4 = vcmp.lt.s32.totalorder %v419_v35, 4 }
 0x118   : > { %v422_v47 = vshrl.u32 %v2021_v37, %v421_v36  ;;  %v424_v48 = vshrl.u32 %v2022_v39, %v421_v36  ;;  %v427_v49 = vshrl.u32 %v2023_v41, %v421_v36  ;;  %v430_v50 = vshrl.u32 %v2024_v43, %v421_v36 }
 0x119   : > { %v433_v51 = vshrl.u32 %v2025_v45, %v421_v36  ;;  %v436_v53 = vshrl.u32 %v2026_v52, %v421_v36  ;;  %vm439_vm5 = vcmp.lt.s32.totalorder %v419_v35, 2  ;;  %vm440_vm6 = vcmp.lt.s32.totalorder %v419_v35, 3 }
 0x11a   : > { %v425_v55 = vor.u32 %v424_v48, %v423_v38  ;;  %v428_v56 = vor.u32 %v427_v49, %v426_v40  ;;  %v431_v57 = vor.u32 %v430_v50, %v429_v42 }
 0x11b   : > { %v434_v58 = vor.u32 %v433_v51, %v432_v44  ;;  %v437_v59 = vor.u32 %v436_v53, %v435_v46 }
 0x11c   : > { %v442_v60 = vsel %vm438_vm3, %v422_v47, %v425_v55  ;;  %v443_v61 = vsel %vm441_vm4, %v431_v57, 2102212464  ;;  %v446_v62 = vsel %vm438_vm3, %v425_v55, %v428_v56  ;;  %v450_v63 = vsel %vm438_vm3, %v428_v56, %v431_v57 }
 0x11d   : > { %v444_v0 = vsel %vm440_vm6, %v428_v56, %v443_v61  ;;  %v447_v1 = vsel %vm441_vm4, %v434_v58, 920167782  ;;  %v451_v2 = vsel %vm441_vm4, %v437_v59, 1326507024 }
 0x11e   : > { %v448_v3 = vsel %vm440_vm6, %v431_v57, %v447_v1  ;;  %v452_v4 = vsel %vm440_vm6, %v434_v58, %v451_v2  ;;  %v445_v5 = vsel %vm439_vm5, %v442_v60, %v444_v0 }
 0x11f   : > { %v449_v6 = vsel %vm439_vm5, %v446_v62, %v448_v3  ;;  %v453_v7 = vsel %vm439_vm5, %v450_v63, %v452_v4  ;;  %v461_v20 = vmul.u32 %v454_v54, %v445_v5 }
 0x120   : > { %v2372_v8 = vmul.u32.u64.low %v454_v54, %v453_v7  ;;  %v2373_v9 = vmul.u32.u64.high %v454_v54, %v453_v7, %v2372_v8  ;;  %v2375_v10 = vmul.u32.u64.low %v454_v54, %v449_v6  ;;  %v2376_v19 = vmul.u32.u64.high %v454_v54, %v449_v6, %v2375_v10 }
 0x122   : > { %vm463_vm7 = vc.u32 %v2373_v9, %v2375_v10  ;;  %v464_v21 = vadd.s32 1, %v2376_v19  ;;  %v462_v35 = vadd.s32 %v2375_v10, %v2373_v9 }
 0x124   : > { %v465_v22 = vsel %vm463_vm7, %v464_v21, %v2376_v19 }
 0x125   : > { %v466_v23 = vadd.s32 %v465_v22, %v461_v20 }
 0x127   : > { %v467_v24 = vadd.s32 536870912, %v466_v23 }
 0x129   : > { %v468_v26 = vshrl.u32 %v467_v24, 30 }
 0x12b   : > { %v469_v27 = vshll.u32 %v468_v26, 30  ;;  %v492_v47 = vsub.s32 4, %v468_v26 }
 0x12d   : > { %v470_v29 = vsub.s32 %v466_v23, %v469_v27  ;;  %v493_v50 = vsel %vm408_vm9, %v492_v47, %v468_v26 }
 0x12e   : > { %v495_v52 = vsel %vm407_vm10, 0, %v493_v50 }
 0x12f   : > { %v472_v30 = vsub.s32 0, %v470_v29  ;;  %v602_v53 = vadd.s32 3, %v495_v52  ;;  %v499_v54 = vand.u32 3, %v495_v52 }
 0x131   : > { %v1480_v31 = vmin.u32 %v472_v30, %v470_v29  ;;  %v603_v55 = vand.u32 3, %v602_v53  ;;  %vm504_vm11 = vcmp.eq.s32.totalorder %v499_v54, 2  ;;  %vm501_vm13 = vcmp.eq.s32.totalorder %v499_v54, 0 }
 0x132   : > { %vm500_vm15 = vcmp.lt.s32.totalorder %v499_v54, 2 }
 0x133   : > { %v474_v32 = vclz %v1480_v31  ;;  %vm608_vm12 = vcmp.eq.s32.totalorder %v603_v55, 2  ;;  %vm605_vm14 = vcmp.eq.s32.totalorder %v603_v55, 0  ;;  %vm604_vm0 = vcmp.lt.s32.totalorder %v603_v55, 2 }
 0x135   : > { %v1481_v33 = vadd.s32 4294967294, %v474_v32 }
 0x137   : > { %vm1482_vm8 = vcmp.lt.s32.totalorder %v1481_v33, 0 }
 0x138   : > { %v477_v34 = vsel %vm1482_vm8, 0, %v1481_v33 }
 0x139   : > { %v478_v36 = vsub.s32 32, %v477_v34  ;;  %v482_v37 = vsub.s32 4294967266, %v477_v34  ;;  %v479_v38 = vshll.u32 %v470_v29, %v477_v34 }
 0x13b   : > { %v480_v39 = vshrl.u32 %v462_v35, %v478_v36  ;;  %v483_v40 = vadd.s32 127, %v482_v37 }
 0x13d   : > { %v481_v41 = vor.u32 %v480_v39, %v479_v38  ;;  %v484_v42 = vshll.u32 %v483_v40, 23 }
 0x13f   : > { %v485_v43 = vor.u32 4788187, %v484_v42  ;;  %v488_v45 = vcvt.s32.f32 %v481_v41 }
 0x141   : > { %v486_v44 = vand.u32 2147483647, %v485_v43 }
 0x143   : > { %v489_v46 = vmul.f32 %v488_v45, %v486_v44 }
 0x145   : > { %v490_v48 = vxor.u32 2147483648, %v489_v46 }
 0x147   : > { %v491_v49 = vsel %vm408_vm9, %v490_v48, %v489_v46 }
 0x148   : > { %v494_v51 = vsel %vm407_vm10, %v2366_v25, %v491_v49 }
 0x149   : > { %1799 = vcosq.f32 %v494_v51 }
 0x14a   : > { %1801 = vsinq.f32 %v494_v51 }
 0x153   : > { %v1800_v56 = vpop.eup %1799 }
 0x154   : > { %v1802_v57 = vpop.eup %1801  ;;  %v505_v58 = vxor.u32 2147483648, %v1800_v56 }
 0x155   : > { %v502_v59 = vxor.u32 2147483648, %v1802_v57 }
 0x156   : > { %v506_v60 = vsel %vm504_vm11, %v505_v58, %v1802_v57  ;;  %v610_v28 = vsel %vm608_vm12, %v505_v58, %v1802_v57 }
 0x157   : > { %v503_v61 = vsel %vm501_vm13, %v1800_v56, %v502_v59  ;;  %v607_v62 = vsel %vm605_vm14, %v1800_v56, %v502_v59 }
 0x158   : > { %v507_v63 = vsel %vm500_vm15, %v503_v61, %v506_v60  ;;  %v611_v0 = vsel %vm604_vm0, %v607_v62, %v610_v28  ;;  %v688_v3 = vpop.f32.mrb[0].mxu0 }
 0x159   : > { %v2387_v1 = vsel %vm498_vm2, nan, %v507_v63  ;;  %v2389_v2 = vsel %vm498_vm2, nan, %v611_v0  ;;  %v767_v4 = vpop.f32.mrb[0].mxu1  ;;  %v1569_v25 = vpop.f32.mrb[1].mxu0 }
 0x15a   : > { %v692_v5 = vmul.f32 %v2300_v11, %v2387_v1  ;;  %v693_v6 = vmul.f32 %v688_v3, %v2389_v2  ;;  %v771_v7 = vmul.f32 %v2303_v12, %v2387_v1  ;;  %v772_v8 = vmul.f32 %v767_v4, %v2389_v2  ;;  %v1580_v9 = vpop.f32.mrb[1].mxu1 }
 0x15b   : > { %v851_v12 = vmul.f32 %v2318_v13, %v2387_v1  ;;  %v931_v22 = vmul.f32 %v2321_v14, %v2387_v1 }
 0x15c   : > { %v694_v10 = vadd.f32 %v693_v6, %v692_v5  ;;  %v773_v19 = vadd.f32 %v772_v8, %v771_v7 }
 0x15e   : > { %695 = vst.msk [vmem:[%s368_s19] sm:$0xff] %vm618_vm1, %v694_v10  ;;  %1490 = vst.msk [vmem:[%s368_s19 + $0x8] sm:$0xff] %vm618_vm1, %v773_v19 }
 0x161   : > { %v847_v11 = vpop.f32.mrb[2].mxu0  ;;  %v927_v20 = vpop.f32.mrb[2].mxu1 }
 0x162   : > { %v852_v21 = vmul.f32 %v847_v11, %v2389_v2  ;;  %v932_v23 = vmul.f32 %v927_v20, %v2389_v2  ;;  %v1591_v24 = vpop.f32.mrb[3].mxu0  ;;  %v1602_v26 = vpop.f32.mrb[3].mxu1 }
 0x164   : > { %v853_v27 = vadd.f32 %v852_v21, %v851_v12  ;;  %v933_v29 = vadd.f32 %v932_v23, %v931_v22 }
 0x166   : > { %1493 = vst.msk [vmem:[%s368_s19 + $0x10] sm:$0xff] %vm618_vm1, %v853_v27  ;;  %1496 = vst.msk [vmem:[%s368_s19 + $0x18] sm:$0xff] %vm618_vm1, %v933_v29 }
 0x167   : > { %1904 = shalt.err (!%p1901_p9)
}
 0x168   : > { %s1905_s11 = scalar_lea.hbm %s2414_s7, 512  ;;  %s1909_s13 = scalar_lea.hbm %s2526_s5, 1024 }
 0x169   : > { %p1906_p8 = scmp.ne.s32.totalorder %s2414_s7, %s1905_s11  ;;  %p1910_p7 = scmp.lt.u32.totalorder %s2414_s7, %s2526_s5 }
 0x16a   : > { %p1911_p13 = scmp.lt.u32.totalorder %s1909_s13, %s1905_s11  ;;  %p1913_p2 = scmp.lt.u32.totalorder %s1905_s11, %s2414_s7 }
 0x16b   : > { %p1907_p6 = pnand %p1906_p8, %p2553_p12 }
 0x16c   : > { %p1912_p10 = por %p1911_p13, %p1910_p7 }
 0x16d   : > { %p1908_p1 = pneg %p1907_p6 }
 0x16e   : > { %p1914_p0 = por %p1913_p2, %p1912_p10 }
 0x170   : > { %p1915_p4 = pnand %p1914_p0, %p1908_p1 }
 0x172   : > { %1918 = shalt.err (!%p1915_p4)
}
 0x173   : > { %s2028_s3 = smov 128   ;;  %s2029_s28 = smov 8   ;;  %v1006_v13 = vpop.f32.mrb[4].mxu0  ;;  %v1085_v14 = vpop.f32.mrb[4].mxu1  ;;  %v1010_v30 = vmul.f32 %v2336_v15, %v2387_v1  ;;  %v1089_v32 = vmul.f32 %v2338_v16, %v2387_v1  ;;  %v1169_v16 = vmul.f32 %v2352_v17, %v2387_v1  ;;  %v1249_v40 = vmul.f32 %v2354_v18, %v2387_v1 }
 0x174   : > { %1707 = dma.vmem_to_hbm [thread:$0]  (%p2553_p12), %s2401_s18, 512, %s2414_s7, %s1255_s29, %s2028_s3, %s2028_s3, %s2029_s28   ;;  %v1011_v31 = vmul.f32 %v1006_v13, %v2389_v2  ;;  %v1090_v33 = vmul.f32 %v1085_v14, %v2389_v2  ;;  %v1613_v34 = vpop.f32.mrb[5].mxu0  ;;  %v1624_v35 = vpop.f32.mrb[5].mxu1 }
 0x175   : > { %s375_s12 = scalar_lea.vmem [#allocation9], %s2277_s15  ;;  %v1165_v15 = vpop.f32.mrb[6].mxu0  ;;  %v1245_v38 = vpop.f32.mrb[6].mxu1  ;;  %s2467_s29 = scalar_lea.hbm %s2527_s6, %s1517_s30 }
 0x176   : > { %v1012_v36 = vadd.f32 %v1011_v31, %v1010_v30  ;;  %v1091_v37 = vadd.f32 %v1090_v33, %v1089_v32  ;;  %s1291_s18 = sshll.u32 %s375_s12, 4  ;;  %v1170_v39 = vmul.f32 %v1165_v15, %v2389_v2  ;;  %v1250_v41 = vmul.f32 %v1245_v38, %v2389_v2  ;;  %v1635_v42 = vpop.f32.mrb[7].mxu0  ;;  %v1646_v43 = vpop.f32.mrb[7].mxu1  ;;  %s1260_s11 = scalar_lea.sflag [#allocation10], %s2274_s8  ;;  %s2460_s18 = int_to_ptr.vmem [resolvable:$true] %s1291_s18 }
 0x177   : > { %s1919_s17 = scalar_lea.vmem %s2460_s18, 512  ;;  %s2030_s19 = smov [#allocation9]  }
 0x178   : > { %1013 = vst.msk [vmem:[%s375_s12] sm:$0xff] %vm618_vm1, %v1012_v36  ;;  %1500 = vst.msk [vmem:[%s375_s12 + $0x8] sm:$0xff] %vm618_vm1, %v1091_v37  ;;  %v1171_v44 = vadd.f32 %v1170_v39, %v1169_v16  ;;  %v1251_v45 = vadd.f32 %v1250_v41, %v1249_v40  ;;  %p1920_p3 = scmp.ne.s32.totalorder %s2460_s18, %s1919_s17  ;;  %s1923_s13 = sshll.u32 %s2030_s19, 4  ;;  %s1924_s13 = int_to_ptr.vmem [resolvable:$false] %s1923_s13 }
 0x179   : > { %s1925_s14 = scalar_lea.vmem %s1924_s13, 1024  ;;  %p1926_p9 = scmp.lt.s32.totalorder %s2460_s18, %s1924_s13 }
 0x17a   : > { %1503 = vst.msk [vmem:[%s375_s12 + $0x10] sm:$0xff] %vm618_vm1, %v1171_v44  ;;  %1506 = vst.msk [vmem:[%s375_s12 + $0x18] sm:$0xff] %vm618_vm1, %v1251_v45  ;;  %p1921_p5 = pnand %p1920_p3, %p2553_p12  ;;  %p1927_p8 = scmp.lt.s32.totalorder %s1925_s14, %s1919_s17 }
 0x17c   : > { %p1922_p11 = pneg %p1921_p5  ;;  %p1928_p6 = por %p1927_p8, %p1926_p9 }
 0x17e   : > { %p1929_p1 = pnand %p1928_p6, %p1922_p11 }
 0x180   : > { %1932 = shalt.err (!%p1929_p1)
}
 0x181   : > { %s1933_s24 = scalar_lea.hbm %s2467_s29, 512  ;;  %s1937_s12 = scalar_lea.hbm %s2527_s6, 1024 }
 0x182   : > { %p1934_p7 = scmp.ne.s32.totalorder %s2467_s29, %s1933_s24  ;;  %p1938_p2 = scmp.lt.u32.totalorder %s2467_s29, %s2527_s6 }
 0x183   : > { %p1939_p0 = scmp.lt.u32.totalorder %s1937_s12, %s1933_s24  ;;  %p1941_p3 = scmp.lt.u32.totalorder %s1933_s24, %s2467_s29 }
 0x184   : > { %p1935_p13 = pnand %p1934_p7, %p2553_p12 }
 0x185   : > { %p1940_p4 = por %p1939_p0, %p1938_p2 }
 0x186   : > { %p1936_p10 = pneg %p1935_p13 }
 0x187   : > { %p1942_p5 = por %p1941_p3, %p1940_p4 }
 0x189   : > { %p1943_p11 = pnand %p1942_p5, %p1936_p10 }
 0x18b   : > { %1946 = shalt.err (!%p1943_p11)
}
 0x18c   : > { %1708 = dma.vmem_to_hbm [thread:$0]  (%p2553_p12), %s2460_s18, 512, %s2467_s29, %s1260_s11, %s2028_s3, %s2028_s3, %s2029_s28  }
 0x18d PF: > { %s1306_s17 = sand.u32 1, %s1989_s21   ;;  %p2554_p9 = scmp.ne.s32.totalorder %s2542_s16, 0 }
 0x18e   : > { %p2555_p8 = scmp.ge.s32.totalorder %s2009_s26, 2  ;;  %s1307_s19 = scalar_lea.sflag [#allocation4], %s1306_s17 }
 0x190   : > { %p1723_p6 = pnand %p2555_p8, %p2554_p9 }
 0x192   : > { %1980 = dma.done.wait (!%p1723_p6), %s1307_s19, 512  }
 0x193   : > { %1982 = vsyncadd (!%p1723_p6), %s1307_s19, 4294966784  ;;  %s1316_s10 = scalar_lea.sflag [#allocation10], %s1306_s17 }
 0x194   : > { %1984 = dma.done.wait (!%p1723_p6), %s1316_s10, 512  }
 0x195   : > { %1986 = vsyncadd (!%p1723_p6), %s1316_s10, 4294966784  ;;  %s27_s26 = sadd.s32 1, %s2009_s26   ;;  %s2556_s21 = smov %s1993_s22 }
 0x196   : > { %p24_p1 = scmp.ge.s32.totalorder %s27_s26, 4   ;;  %s2557_s22 = smov %s1997_s23 }
 0x197   : > { %s2558_s23 = smov %s2117_s9  ;;  %s2559_s24 = smov %s2005_s25 }
 0x198   : > { %s2560_s25 = smov %s2562_s27  ;;  %26 = sbr.rel (!%p24_p1) target bundleno = 11 (0xb), region = 133 }
 0x19f   :  { %1321 = vsyncpa [#allocation3], 1 }
 0x1a0   :  { %1323 = vsyncpa [#allocation3 + $0x1], 1 }
 0x1a1   :  { %1324 = vsyncpa [#allocation6], 1 }
 0x1a2   :  { %1326 = vsyncpa [#allocation6 + $0x1], 1 }
 0x1a3   :  { %1327 = vsyncpa [#allocation4], 1 }
 0x1a4   :  { %1329 = vsyncpa [#allocation4 + $0x1], 1 }
 0x1a5   :  { %1330 = vsyncpa [#allocation10], 1 }
 0x1a6   :  { %1332 = vsyncpa [#allocation10 + $0x1], 1 }

</bundles_post_ra>
